<compile_context>
chip_gen: v7x
topology: tpu7x:2x2x1
jax: 0.10.0
libtpu: 0.0.40
codegen_flags: <defaults>
</compile_context>

<pallas_src>
import functools

import jax
import jax.numpy as jnp
from jax.experimental import pallas as pl
from jax.experimental.pallas import tpu as pltpu


def _online_contrastive_kernel(o1_ref, o2_ref, tgt_ref, loss_ref, dist_ref,
                               *, margin, tile_b):
    i = pl.program_id(0)
    n_tiles = pl.num_programs(0)

    # ---- phase 1: cosine distance for this (TILE_B, D) tile --------------------
    a = o1_ref[...].astype(jnp.float32)
    b = o2_ref[...].astype(jnp.float32)

    eps2 = jnp.float32(1e-16)                        # (1e-8)^2 clamp on squared norms
    dot = jnp.sum(a * b, axis=-1, keepdims=True)     # (TILE_B, 1)
    sa = jnp.sum(a * a, axis=-1, keepdims=True)
    sb = jnp.sum(b * b, axis=-1, keepdims=True)
    # 1 / (max(||a||,eps) * max(||b||,eps)) == rsqrt(max(sa,eps^2) * max(sb,eps^2))
    inv_norm = jax.lax.rsqrt(jnp.maximum(sa, eps2) * jnp.maximum(sb, eps2))
    dist = 1.0 - dot * inv_norm                      # (TILE_B, 1)

    row0 = pl.multiple_of(i * tile_b, tile_b)
    dist_ref[pl.ds(row0, tile_b), :] = dist

    # ---- phase 2: global thresholds + hard-pair selection (last step only) -----
    @pl.when(i == n_tiles - 1)
    def _finalize():
        d = dist_ref[...]                            # (B_pad, 1) f32
        tgt = tgt_ref[...]                           # (B_pad, 1) i32, padded rows == -1
        pos = tgt == 1
        neg = tgt == 0

        n_pos = jnp.sum(pos.astype(jnp.float32))
        n_neg = jnp.sum(neg.astype(jnp.float32))

        big = jnp.float32(3.4e38)                    # dist bounded in [0,2]; no inf needed
        pos_max = jnp.max(jnp.where(pos, d, -big))
        neg_min = jnp.min(jnp.where(neg, d, big))
        # NaN-safe masked means (padded rows may hold garbage distances).
        pos_mean = jnp.sum(jnp.where(pos, d, 0.0)) / jnp.maximum(n_pos, 1.0)
        neg_mean = jnp.sum(jnp.where(neg, d, 0.0)) / jnp.maximum(n_neg, 1.0)

        # thresholds exactly as in the PyTorch forward
        thresh_for_neg = jnp.where(n_pos > 1.0, pos_max, neg_mean)
        thresh_for_pos = jnp.where(n_neg > 1.0, neg_min, pos_mean)

        sel_pos = jnp.logical_and(pos, d > thresh_for_pos)   # hard positives
        sel_neg = jnp.logical_and(neg, d < thresh_for_neg)   # hard negatives

        positive_loss = jnp.sum(jnp.where(sel_pos, d * d, 0.0))
        hinge = jnp.maximum(jnp.float32(margin) - d, 0.0)
        negative_loss = jnp.sum(jnp.where(sel_neg, hinge * hinge, 0.0))

        loss_ref[0, 0] = positive_loss + negative_loss


_INPUT_VMEM_BUDGET = 16 * 1024 * 1024   # bytes for 2 inputs x 2 pipeline buffers


def online_contrastive_loss(output1, output2, target, margin=0.5, tile_b=None):
    """output1, output2: (B, D) float (any float dtype, passed at native width);
    target: (B,) 0/1 ints.  Returns scalar f32 loss."""
    B, D = output1.shape
    itemsize = jnp.dtype(output1.dtype).itemsize

    # --- tile sizing: biggest B-tile whose double-buffered inputs fit the budget ---
    if tile_b is None:
        tile_b = _INPUT_VMEM_BUDGET // max(4 * D * itemsize, 1)
    tile_b = max(8, min(int(tile_b), 1024))
    tile_b = (tile_b // 8) * 8                       # sublane-aligned
    tile_b = min(tile_b, max(8, ((B + 7) // 8) * 8)) # no bigger than (padded) batch

    num_tiles = (B + tile_b - 1) // tile_b
    b_pad = num_tiles * tile_b

    # Pad only the tiny target column; sentinel -1 excludes padded rows everywhere.
    tgt = target.reshape(B).astype(jnp.int32)
    tgt = jnp.pad(tgt, (0, b_pad - B), constant_values=-1).reshape(b_pad, 1)

    kernel = functools.partial(_online_contrastive_kernel,
                               margin=float(margin), tile_b=tile_b)

    cost = pl.CostEstimate(
        flops=int(6 * B * D + 16 * B),
        transcendentals=int(B),
        bytes_accessed=int(2 * B * D * itemsize + b_pad * 4 + 4),
    )

    loss = pl.pallas_call(
        kernel,
        grid=(num_tiles,),
        in_specs=[
            pl.BlockSpec((tile_b, D), lambda i: (i, 0)),    # output1 B-tiles
            pl.BlockSpec((tile_b, D), lambda i: (i, 0)),    # output2 B-tiles
            pl.BlockSpec((b_pad, 1), lambda i: (0, 0)),     # target, VMEM-resident
        ],
        out_specs=pl.BlockSpec(memory_space=pltpu.MemorySpace.SMEM),
        out_shape=jax.ShapeDtypeStruct((1, 1), jnp.float32),
        scratch_shapes=[pltpu.VMEM((b_pad, 1), jnp.float32)],   # per-row distances
        compiler_params=pltpu.CompilerParams(
            dimension_semantics=("arbitrary",),   # grid axis carries scratch + output
            vmem_limit_bytes=32 * 1024 * 1024,
        ),
        cost_estimate=cost,
    )(output1, output2, tgt)
    # TODO(synk): on v7x, split the distance phase across the 2 TensorCores
    # (core_map + run_on_first_core for the selection pass) for very large batches.
    return loss[0, 0]


def _reference(output1, output2, target, margin=0.5):
    # pure-JAX reference mirroring the PyTorch code (for sanity checking)
    eps = 1e-8
    o1 = output1.astype(jnp.float32)
    o2 = output2.astype(jnp.float32)
    dot = jnp.sum(o1 * o2, axis=-1)
    na = jnp.maximum(jnp.linalg.norm(o1, axis=-1), eps)
    nb = jnp.maximum(jnp.linalg.norm(o2, axis=-1), eps)
    dist = 1.0 - dot / (na * nb)
    pos_mask = target == 1
    neg_mask = target == 0
    n_pos = jnp.sum(pos_mask)
    n_neg = jnp.sum(neg_mask)
    pos_max = jnp.max(jnp.where(pos_mask, dist, -jnp.inf))
    neg_min = jnp.min(jnp.where(neg_mask, dist, jnp.inf))
    pos_mean = jnp.sum(jnp.where(pos_mask, dist, 0.0)) / jnp.maximum(n_pos, 1)
    neg_mean = jnp.sum(jnp.where(neg_mask, dist, 0.0)) / jnp.maximum(n_neg, 1)
    t_neg = jnp.where(n_pos > 1, pos_max, neg_mean)
    t_pos = jnp.where(n_neg > 1, neg_min, pos_mean)
    sel_neg = neg_mask & (dist < t_neg)
    sel_pos = pos_mask & (dist > t_pos)
    pos_loss = jnp.sum(jnp.where(sel_pos, dist ** 2, 0.0))
    neg_loss = jnp.sum(jnp.where(sel_neg, jnp.maximum(margin - dist, 0.0) ** 2, 0.0))
    return pos_loss + neg_loss


if __name__ == "__main__":
    key = jax.random.PRNGKey(0)
    k1, k2, k3, k4, k5, k6 = jax.random.split(key, 6)

    # Case 1: tiny f32 batch (single tile, auto tile size).
    B, D = 8, 32
    output1 = jax.random.normal(k1, (B, D), dtype=jnp.float32)
    output2 = jax.random.normal(k2, (B, D), dtype=jnp.float32)
    target = jax.random.randint(k3, (B,), 0, 2, dtype=jnp.int32)

    loss = online_contrastive_loss(output1, output2, target, margin=0.5)
    loss = jax.block_until_ready(loss)
    ref = _reference(output1, output2, target, margin=0.5)
    assert jnp.allclose(loss, ref, atol=1e-5, rtol=1e-5), (loss, ref)

    # Case 2: bf16 inputs, non-multiple batch, forced small tile -> exercises the
    # multi-tile pipeline, edge-block padding, and the native-dtype pass-through.
    B2, D2 = 37, 128
    o1b = jax.random.normal(k4, (B2, D2), dtype=jnp.bfloat16)
    o2b = jax.random.normal(k5, (B2, D2), dtype=jnp.bfloat16)
    tgt2 = jax.random.randint(k6, (B2,), 0, 2, dtype=jnp.int32)

    loss2 = online_contrastive_loss(o1b, o2b, tgt2, margin=0.5, tile_b=16)
    loss2 = jax.block_until_ready(loss2)
    ref2 = _reference(o1b, o2b, tgt2, margin=0.5)
    assert jnp.allclose(loss2, ref2, atol=1e-4, rtol=1e-4), (loss2, ref2)

    print("KERNEL_OK")
</pallas_src>

<mosaic_0001>
module attributes {stable_mosaic.version = 11 : i64} {
  func.func @_online_contrastive_kernel(%arg0: i32, %arg1: memref<8x32xf32, #tpu.memory_space<vmem>>, %arg2: memref<8x32xf32, #tpu.memory_space<vmem>>, %arg3: memref<8x1xi32, #tpu.memory_space<vmem>>, %arg4: memref<1x1xf32, #tpu.memory_space<smem>>, %arg5: memref<8x1xf32, #tpu.memory_space<vmem>>) attributes {dimension_semantics = [#tpu.dimension_semantics<arbitrary>], iteration_bounds = array<i64: 1>, scalar_prefetch = 0 : i64, scratch_operands = 1 : i64, tpu.core_type = #tpu.core_type<tc>, window_params = [{transform_indices = @transform_0, window_bounds = array<i64: 8, 32>}, {transform_indices = @transform_1, window_bounds = array<i64: 8, 32>}, {pipeline_mode = #tpu.pipeline_mode<synchronous>, transform_indices = @transform_2, window_bounds = array<i64: 8, 1>}, {transform_indices = @transform_3, window_bounds = array<i64: 1, 1>}]} {
    %c0 = arith.constant 0 : index
    %c0_0 = arith.constant 0 : index
    %0 = vector.load %arg1[%c0, %c0_0] : memref<8x32xf32, #tpu.memory_space<vmem>>, vector<8x32xf32>
    %c0_1 = arith.constant 0 : index
    %c0_2 = arith.constant 0 : index
    %1 = vector.load %arg2[%c0_1, %c0_2] : memref<8x32xf32, #tpu.memory_space<vmem>>, vector<8x32xf32>
    %2 = arith.mulf %0, %1 : vector<8x32xf32>
    %cst = arith.constant dense<0.000000e+00> : vector<8xf32>
    %3 = vector.multi_reduction <add>, %2, %cst [1] : vector<8x32xf32> to vector<8xf32>
    %4 = vector.shape_cast %3 : vector<8xf32> to vector<8x1xf32>
    %5 = arith.mulf %0, %0 : vector<8x32xf32>
    %cst_3 = arith.constant dense<0.000000e+00> : vector<8xf32>
    %6 = vector.multi_reduction <add>, %5, %cst_3 [1] : vector<8x32xf32> to vector<8xf32>
    %7 = vector.shape_cast %6 : vector<8xf32> to vector<8x1xf32>
    %8 = arith.mulf %1, %1 : vector<8x32xf32>
    %cst_4 = arith.constant dense<0.000000e+00> : vector<8xf32>
    %9 = vector.multi_reduction <add>, %8, %cst_4 [1] : vector<8x32xf32> to vector<8xf32>
    %10 = vector.shape_cast %9 : vector<8xf32> to vector<8x1xf32>
    %cst_5 = arith.constant 1.000000e-16 : f32
    %11 = vector.broadcast %cst_5 : f32 to vector<8x1xf32>
    %12 = arith.maximumf %7, %11 : vector<8x1xf32>
    %cst_6 = arith.constant 1.000000e-16 : f32
    %13 = vector.broadcast %cst_6 : f32 to vector<8x1xf32>
    %14 = arith.maximumf %10, %13 : vector<8x1xf32>
    %15 = arith.mulf %12, %14 : vector<8x1xf32>
    %16 = math.rsqrt %15 : vector<8x1xf32>
    %17 = arith.mulf %4, %16 : vector<8x1xf32>
    %cst_7 = arith.constant 1.000000e+00 : f32
    %18 = vector.broadcast %cst_7 : f32 to vector<8x1xf32>
    %19 = arith.subf %18, %17 : vector<8x1xf32>
    %c8_i32 = arith.constant 8 : i32
    %20 = arith.muli %arg0, %c8_i32 : i32
    %21 = tpu.assume_multiple %20, 8 : i32
    %22 = arith.index_cast %21 : i32 to index
    %c0_8 = arith.constant 0 : index
    %23 = vector.load %arg5[%22, %c0_8] : memref<8x1xf32, #tpu.memory_space<vmem>>, vector<8x1xf32>
    tpu.vector_store %arg5[%22, %c0_8], %19 {strides = array<i32>} : memref<8x1xf32, #tpu.memory_space<vmem>>, vector<8x1xf32>,
    %c0_i32 = arith.constant 0 : i32
    %24 = arith.cmpi eq, %arg0, %c0_i32 : i32
    %25 = arith.extui %24 : i1 to i32
    %c0_i32_9 = arith.constant 0 : i32
    %26 = arith.cmpi ne, %25, %c0_i32_9 : i32
    scf.if %26 {
      %c0_10 = arith.constant 0 : index
      %c0_11 = arith.constant 0 : index
      %27 = vector.load %arg5[%c0_10, %c0_11] : memref<8x1xf32, #tpu.memory_space<vmem>>, vector<8x1xf32>
      %c0_12 = arith.constant 0 : index
      %c0_13 = arith.constant 0 : index
      %28 = vector.load %arg3[%c0_12, %c0_13] : memref<8x1xi32, #tpu.memory_space<vmem>>, vector<8x1xi32>
      %c1_i32 = arith.constant 1 : i32
      %29 = vector.broadcast %c1_i32 : i32 to vector<8x1xi32>
      %30 = arith.cmpi eq, %28, %29 : vector<8x1xi32>
      %c0_i32_14 = arith.constant 0 : i32
      %31 = vector.broadcast %c0_i32_14 : i32 to vector<8x1xi32>
      %32 = arith.cmpi eq, %28, %31 : vector<8x1xi32>
      %33 = arith.extui %30 : vector<8x1xi1> to vector<8x1xi32>
      %34 = arith.sitofp %33 : vector<8x1xi32> to vector<8x1xf32>
      %35 = vector.shape_cast %34 : vector<8x1xf32> to vector<1x8x1xf32>
      %cst_15 = arith.constant dense<0.000000e+00> : vector<1xf32>
      %36 = vector.multi_reduction <add>, %35, %cst_15 [1, 2] : vector<1x8x1xf32> to vector<1xf32>
      %37 = vector.shape_cast %36 : vector<1xf32> to vector<1x1x1xf32>
      %38 = vector.extract %37[0, 0, 0] : f32 from vector<1x1x1xf32>
      %39 = arith.extui %32 : vector<8x1xi1> to vector<8x1xi32>
      %40 = arith.sitofp %39 : vector<8x1xi32> to vector<8x1xf32>
      %41 = vector.shape_cast %40 : vector<8x1xf32> to vector<1x8x1xf32>
      %cst_16 = arith.constant dense<0.000000e+00> : vector<1xf32>
      %42 = vector.multi_reduction <add>, %41, %cst_16 [1, 2] : vector<1x8x1xf32> to vector<1xf32>
      %43 = vector.shape_cast %42 : vector<1xf32> to vector<1x1x1xf32>
      %44 = vector.extract %43[0, 0, 0] : f32 from vector<1x1x1xf32>
      %cst_17 = arith.constant 0.000000e+00 : f32
      %cst_18 = arith.constant 3.400000e+38 : f32
      %45 = arith.subf %cst_17, %cst_18 : f32
      %46 = vector.broadcast %45 : f32 to vector<8x1xf32>
      %47 = arith.select %30, %27, %46 : vector<8x1xi1>, vector<8x1xf32>
      %48 = vector.shape_cast %47 : vector<8x1xf32> to vector<1x8x1xf32>
      %cst_19 = arith.constant dense<0xFF800000> : vector<1xf32>
      %49 = vector.multi_reduction <maximumf>, %48, %cst_19 [1, 2] : vector<1x8x1xf32> to vector<1xf32>
      %50 = vector.shape_cast %49 : vector<1xf32> to vector<1x1x1xf32>
      %51 = vector.extract %50[0, 0, 0] : f32 from vector<1x1x1xf32>
      %cst_20 = arith.constant 3.400000e+38 : f32
      %52 = vector.broadcast %cst_20 : f32 to vector<8x1xf32>
      %53 = arith.select %32, %27, %52 : vector<8x1xi1>, vector<8x1xf32>
      %54 = vector.shape_cast %53 : vector<8x1xf32> to vector<1x8x1xf32>
      %cst_21 = arith.constant dense<0x7F800000> : vector<1xf32>
      %55 = vector.multi_reduction <minimumf>, %54, %cst_21 [1, 2] : vector<1x8x1xf32> to vector<1xf32>
      %56 = vector.shape_cast %55 : vector<1xf32> to vector<1x1x1xf32>
      %57 = vector.extract %56[0, 0, 0] : f32 from vector<1x1x1xf32>
      %cst_22 = arith.constant 0.000000e+00 : f32
      %58 = vector.broadcast %cst_22 : f32 to vector<8x1xf32>
      %59 = arith.select %30, %27, %58 : vector<8x1xi1>, vector<8x1xf32>
      %60 = vector.shape_cast %59 : vector<8x1xf32> to vector<1x8x1xf32>
      %cst_23 = arith.constant dense<0.000000e+00> : vector<1xf32>
      %61 = vector.multi_reduction <add>, %60, %cst_23 [1, 2] : vector<1x8x1xf32> to vector<1xf32>
      %62 = vector.shape_cast %61 : vector<1xf32> to vector<1x1x1xf32>
      %63 = vector.extract %62[0, 0, 0] : f32 from vector<1x1x1xf32>
      %cst_24 = arith.constant 1.000000e+00 : f32
      %64 = arith.maximumf %38, %cst_24 : f32
      %65 = arith.divf %63, %64 : f32
      %cst_25 = arith.constant 0.000000e+00 : f32
      %66 = vector.broadcast %cst_25 : f32 to vector<8x1xf32>
      %67 = arith.select %32, %27, %66 : vector<8x1xi1>, vector<8x1xf32>
      %68 = vector.shape_cast %67 : vector<8x1xf32> to vector<1x8x1xf32>
      %cst_26 = arith.constant dense<0.000000e+00> : vector<1xf32>
      %69 = vector.multi_reduction <add>, %68, %cst_26 [1, 2] : vector<1x8x1xf32> to vector<1xf32>
      %70 = vector.shape_cast %69 : vector<1xf32> to vector<1x1x1xf32>
      %71 = vector.extract %70[0, 0, 0] : f32 from vector<1x1x1xf32>
      %cst_27 = arith.constant 1.000000e+00 : f32
      %72 = arith.maximumf %44, %cst_27 : f32
      %73 = arith.divf %71, %72 : f32
      %cst_28 = arith.constant 1.000000e+00 : f32
      %74 = arith.cmpf ogt, %38, %cst_28 : f32
      %75 = arith.select %74, %51, %73 : f32
      %cst_29 = arith.constant 1.000000e+00 : f32
      %76 = arith.cmpf ogt, %44, %cst_29 : f32
      %77 = arith.select %76, %57, %65 : f32
      %78 = vector.broadcast %77 : f32 to vector<8x1xf32>
      %79 = arith.cmpf ogt, %27, %78 : vector<8x1xf32>
      %80 = arith.andi %30, %79 : vector<8x1xi1>
      %81 = vector.broadcast %75 : f32 to vector<8x1xf32>
      %82 = arith.cmpf olt, %27, %81 : vector<8x1xf32>
      %83 = arith.andi %32, %82 : vector<8x1xi1>
      %84 = arith.mulf %27, %27 : vector<8x1xf32>
      %cst_30 = arith.constant 0.000000e+00 : f32
      %85 = vector.broadcast %cst_30 : f32 to vector<8x1xf32>
      %86 = arith.select %80, %84, %85 : vector<8x1xi1>, vector<8x1xf32>
      %87 = vector.shape_cast %86 : vector<8x1xf32> to vector<1x8x1xf32>
      %cst_31 = arith.constant dense<0.000000e+00> : vector<1xf32>
      %88 = vector.multi_reduction <add>, %87, %cst_31 [1, 2] : vector<1x8x1xf32> to vector<1xf32>
      %89 = vector.shape_cast %88 : vector<1xf32> to vector<1x1x1xf32>
      %90 = vector.extract %89[0, 0, 0] : f32 from vector<1x1x1xf32>
      %cst_32 = arith.constant 5.000000e-01 : f32
      %91 = vector.broadcast %cst_32 : f32 to vector<8x1xf32>
      %92 = arith.subf %91, %27 : vector<8x1xf32>
      %cst_33 = arith.constant 0.000000e+00 : f32
      %93 = vector.broadcast %cst_33 : f32 to vector<8x1xf32>
      %94 = arith.maximumf %92, %93 : vector<8x1xf32>
      %95 = arith.mulf %94, %94 : vector<8x1xf32>
      %cst_34 = arith.constant 0.000000e+00 : f32
      %96 = vector.broadcast %cst_34 : f32 to vector<8x1xf32>
      %97 = arith.select %83, %95, %96 : vector<8x1xi1>, vector<8x1xf32>
      %98 = vector.shape_cast %97 : vector<8x1xf32> to vector<1x8x1xf32>
      %cst_35 = arith.constant dense<0.000000e+00> : vector<1xf32>
      %99 = vector.multi_reduction <add>, %98, %cst_35 [1, 2] : vector<1x8x1xf32> to vector<1xf32>
      %100 = vector.shape_cast %99 : vector<1xf32> to vector<1x1x1xf32>
      %101 = vector.extract %100[0, 0, 0] : f32 from vector<1x1x1xf32>
      %102 = arith.addf %90, %101 : f32
      %c0_36 = arith.constant 0 : index
      %c0_37 = arith.constant 0 : index
      %103 = memref.load %arg4[%c0_36, %c0_37] : memref<1x1xf32, #tpu.memory_space<smem>>
      memref.store %102, %arg4[%c0_36, %c0_37] : memref<1x1xf32, #tpu.memory_space<smem>>
    } else {
    }
    return
  }
  func.func @transform_0(%arg0: i32) -> (i32, i32) {
    %c0_i32 = arith.constant 0 : i32
    %c0_i32_0 = arith.constant 0 : i32
    return %arg0, %c0_i32 : i32, i32
  }
  func.func @transform_1(%arg0: i32) -> (i32, i32) {
    %c0_i32 = arith.constant 0 : i32
    %c0_i32_0 = arith.constant 0 : i32
    return %arg0, %c0_i32 : i32, i32
  }
  func.func @transform_2(%arg0: i32) -> (i32, i32) {
    %c0_i32 = arith.constant 0 : i32
    %c0_i32_0 = arith.constant 0 : i32
    %c0_i32_1 = arith.constant 0 : i32
    return %c0_i32, %c0_i32_0 : i32, i32
  }
  func.func @transform_3(%arg0: i32) -> (i32, i32) {
    %c0_i32 = arith.constant 0 : i32
    %c0_i32_0 = arith.constant 0 : i32
    %c0_i32_1 = arith.constant 0 : i32
    return %c0_i32, %c0_i32_0 : i32, i32
  }
}

</mosaic_0001>

<bundles_post_ra>
// kernel: tpu_custom_call.1
= control target key start
LH: loop header
LB: loop body
LE: loop exit
PB: predicated region body
PF: predicated region fallthrough
CT: control target
= control target key end

     0   :  { %8 = vsyncpa [#allocation4], 0  ;;  %s361_s0 = inlined_call_operand.vmem [shape: f32[8,32], index: 0, kind: input, shape index: {}]   ;;  %s362_s1 = inlined_call_operand.hbm [shape: f32[8,32], index: 1, kind: input, shape index: {}]   ;;  %s363_s2 = inlined_call_operand.vmem [shape: s32[8,1], index: 2, kind: input, shape index: {}]   ;;  %s364_s3 = inlined_call_operand.hbm [shape: f32[1,1], index: 3, kind: output, shape index: {}]  }
   0x1   :  { %9 = vsyncpa [#allocation5], 0  ;;  %s259_s12 = smov [#allocation3]   ;;  %s223_s16 = scalar_lea.hbm %s362_s1, 128 }
   0x2   :  { %s18_s13 = sshll.u32 %s259_s12, 4  ;;  %p224_p0 = scmp.ne.s32.totalorder %s362_s1, %s223_s16  ;;  %s19_s13 = int_to_ptr.vmem [resolvable:$true] %s18_s13 }
   0x3   :  { %p227_p1 = scmp.lt.u32.totalorder %s223_s16, %s362_s1 }
   0x5   :  { %p229_p2 = pnand %p227_p1, %p224_p0 }
   0x7   :  { %232 = shalt.err (!%p229_p2)
}
   0x8   :  { %s233_s21 = scalar_lea.vmem %s19_s13, 128  ;;  %p238_p4 = scmp.lt.s32.totalorder %s19_s13, %s19_s13 }
   0x9   :  { %p234_p3 = scmp.ne.s32.totalorder %s19_s13, %s233_s21  ;;  %p239_p5 = scmp.lt.s32.totalorder %s233_s21, %s233_s21 }
   0xb   :  { %p240_p6 = por %p239_p5, %p238_p4 }
   0xd   :  { %p241_p7 = pnand %p240_p6, %p234_p3 }
   0xf   :  { %244 = shalt.err (!%p241_p7)
}
  0x10   :  { %21 = dma.hbm_to_vmem [thread:$0]  %s362_s1, 128, %s19_s13, [#allocation4]  }
  0x11   :  { %255 = dma.done.wait [#allocation4], 128  }
  0x12   :  { %256 = vsyncadd [#allocation4], 4294967168  ;;  %v27_v0 = vld [vmem:[%s361_s0] sm:$0xff]  ;;  %vm30_vm0 = vcmask 261120   ;;  %v28_v1 = vld [vmem:[#allocation3] sm:$0xff]  ;;  %vm50_vm1 = vcmask 7168  }
  0x13   :  { %v301_v2 = vld [vmem:[%s363_s2] sm:$0xff]  ;;  %v34_v3 = vmul.f32 %v27_v0, %v27_v0  ;;  %v38_v4 = vmul.f32 %v28_v1, %v28_v1  ;;  %v29_v5 = vmul.f32 %v28_v1, %v27_v0  ;;  %v260_v8 = vmov 0.0   ;;  %s261_s2 = smov 1.0   ;;  %s245_s16 = scalar_lea.hbm %s364_s3, 16 }
  0x14   :  { %vm58_vm2 = vcmp.eq.s32.totalorder %v301_v2, 1  ;;  %vm59_vm3 = vcmp.eq.s32.totalorder %v301_v2, 0  ;;  %p246_p10 = scmp.ne.s32.totalorder %s364_s3, %s245_s16  ;;  %p249_p11 = scmp.lt.u32.totalorder %s245_s16, %s364_s3 }
  0x15   :  { %v35_v6 = vsel %vm30_vm0, %v34_v3, 0.0  ;;  %v31_v7 = vsel %vm30_vm0, %v29_v5, 0.0  ;;  %v191_v9 = vsel %vm58_vm2, 1.0, %v260_v8  ;;  %v39_v10 = vsel %vm30_vm0, %v38_v4, 0.0 }
  0x16   :  { %36 = vadd.xlane.f32.xlu0 %v35_v6  ;;  %32 = vadd.xlane.f32.xlu1 %v31_v7  ;;  %v62_v11 = vsel %vm50_vm1, %v191_v9, 0.0  ;;  %v192_v12 = vsel %vm59_vm3, 1.0, %v260_v8  ;;  %p251_p12 = pnand %p249_p11, %p246_p10 }
  0x17   :  { %v74_v13 = vsel %vm50_vm1, %v192_v12, 0.0 }
  0x1a   :  { %40 = vadd.xlane.f32.xlu0 %v39_v10  ;;  %63 = vadd.xlane.f32.xlu1 %v62_v11 }
  0x1e   :  { %75 = vadd.xlane.f32.xlu0 %v74_v13 }
  0xa3   :  { %v37_v14 = vpop.xlane.xlu0 %36  ;;  %v33_v15 = vpop.xlane.xlu1 %32 }
  0xa4   :  { %v42_v18 = vmax.f32 %v37_v14, 1e-16 }
  0xa7   :  { %v41_v16 = vpop.xlane.xlu0 %40  ;;  %v64_v17 = vpop.xlane.xlu1 %63 }
  0xa8   :  { %v43_v19 = vmax.f32 %v41_v16, 1e-16  ;;  %v65_v20 = vrot.slane %v64_v17, 4 }
  0xaa   :  { %v44_v21 = vmul.f32 %v43_v19, %v42_v18  ;;  %v66_v22 = vadd.f32 %v65_v20, %v64_v17 }
  0xab   :  { %v76_v23 = vpop.xlane.xlu0 %75 }
  0xac   :  { %217 = vrsqrt.f32 %v44_v21  ;;  %v77_v24 = vrot.slane %v76_v23, 4  ;;  %v67_v25 = vrot.slane %v66_v22, 2 }
  0xae   :  { %v78_v26 = vadd.f32 %v77_v24, %v76_v23  ;;  %v68_v27 = vadd.f32 %v67_v25, %v66_v22 }
  0xb0   :  { %v79_v28 = vrot.slane %v78_v26, 2  ;;  %v69_v29 = vrot.slane %v68_v27, 1 }
  0xb2   :  { %v70_v30 = vadd.f32 %v69_v29, %v68_v27  ;;  %v80_v31 = vadd.f32 %v79_v28, %v78_v26 }
  0xb4   :  { %193 = vpush %v70_v30  ;;  %v81_v32 = vrot.slane %v80_v31, 1 }
  0xb6   :  { %v218_v33 = vpop.eup %217  ;;  %v82_v34 = vadd.f32 %v81_v32, %v80_v31 }
  0xb7   :  { %v46_v35 = vmul.f32 %v218_v33, %v33_v15 }
  0xb8   :  { %195 = vpush %v82_v34 }
  0xb9   :  { %v47_v36 = vsub.f32 1.0, %v46_v35 }
  0xbb   :  { %51 = vst.msk [vmem:[#allocation2] sm:$0xff] %vm50_vm1, %v47_v36 }
  0xc2   :  { %v312_v37 = vld [vmem:[#allocation2] sm:$0xff] }
  0xc3   :  { %v95_v38 = vsel %vm59_vm3, %v312_v37, 3.4e+38  ;;  %v84_v39 = vsel %vm58_vm2, %v312_v37, -3.4e+38  ;;  %v122_v42 = vsel %vm59_vm3, %v312_v37, 0.0  ;;  %v106_v43 = vsel %vm58_vm2, %v312_v37, 0.0 }
  0xc4   :  { %v96_v40 = vsel %vm50_vm1, %v95_v38, inf  ;;  %v85_v41 = vsel %vm50_vm1, %v84_v39, -inf  ;;  %v123_v44 = vsel %vm50_vm1, %v122_v42, 0.0  ;;  %v107_v45 = vsel %vm50_vm1, %v106_v43, 0.0 }
  0xc5   :  { %97 = vmin.xlane.f32.xlu0 %v96_v40  ;;  %86 = vmax.xlane.f32.xlu1 %v85_v41  ;;  %v160_v15 = vsub.f32 0.5, %v312_v37  ;;  %v148_v19 = vmul.f32 %v312_v37, %v312_v37 }
  0xc7   :  { %v161_v16 = vmax.f32 %v160_v15, 0.0 }
  0xc9   :  { %124 = vadd.xlane.f32.xlu0 %v123_v44  ;;  %108 = vadd.xlane.f32.xlu1 %v107_v45  ;;  %v162_v20 = vmul.f32 %v161_v16, %v161_v16 }
  0xe5   :  { %s330_s0 = spop %193 }
  0xe6   :  { %s117_s28 = smax.f32 %s261_s2, %s330_s0  ;;  %p138_p9 = scmp.gt.f32.partialorder %s330_s0, 1.0 }
  0xe7   :  { %v118_v50 = vstv %s117_s28 }
  0xe8   :  { %219 = vrcp.f32 %v118_v50 }
  0xe9   :  { %s332_s1 = spop %195 }
  0xea   :  { %s133_s29 = smax.f32 %s261_s2, %s332_s1  ;;  %p140_p8 = scmp.gt.f32.partialorder %s332_s1, 1.0 }
  0xeb   :  { %v134_v53 = vstv %s133_s29 }
  0xec   :  { %221 = vrcp.f32 %v134_v53 }
  0xf2   :  { %v220_v13 = vpop.eup %219 }
  0xf6   :  { %v222_v14 = vpop.eup %221 }
 0x152   :  { %v98_v46 = vpop.xlane.xlu0 %97  ;;  %v87_v47 = vpop.xlane.xlu1 %86 }
 0x153   :  { %v99_v48 = vrot.slane %v98_v46, 4  ;;  %v88_v49 = vrot.slane %v87_v47, 4 }
 0x155   :  { %v100_v51 = vmin.f32 %v98_v46, %v99_v48  ;;  %v89_v52 = vmax.f32 %v87_v47, %v88_v49 }
 0x156   :  { %v125_v54 = vpop.xlane.xlu0 %124  ;;  %v109_v55 = vpop.xlane.xlu1 %108 }
 0x157   :  { %v101_v56 = vrot.slane %v100_v51, 2  ;;  %v90_v57 = vrot.slane %v89_v52, 2  ;;  %v126_v58 = vrot.slane %v125_v54, 4  ;;  %v110_v59 = vrot.slane %v109_v55, 4 }
 0x159   :  { %v127_v60 = vadd.f32 %v126_v58, %v125_v54  ;;  %v111_v61 = vadd.f32 %v110_v59, %v109_v55  ;;  %v91_v62 = vmax.f32 %v89_v52, %v90_v57  ;;  %v102_v63 = vmin.f32 %v100_v51, %v101_v56 }
 0x15b   :  { %v128_v0 = vrot.slane %v127_v60, 2  ;;  %v112_v1 = vrot.slane %v111_v61, 2  ;;  %v92_v3 = vrot.slane %v91_v62, 1  ;;  %v103_v4 = vrot.slane %v102_v63, 1 }
 0x15d   :  { %v93_v5 = vmax.f32 %v91_v62, %v92_v3  ;;  %v104_v6 = vmin.f32 %v102_v63, %v103_v4  ;;  %v113_v7 = vadd.f32 %v112_v1, %v111_v61  ;;  %v129_v8 = vadd.f32 %v128_v0, %v127_v60 }
 0x15f   :  { %197 = vpush %v93_v5  ;;  %v114_v9 = vrot.slane %v113_v7, 1  ;;  %v130_v10 = vrot.slane %v129_v8, 1 }
 0x160   :  { %199 = vpush %v104_v6 }
 0x161   :  { %v115_v11 = vadd.f32 %v114_v9, %v113_v7  ;;  %v131_v12 = vadd.f32 %v130_v10, %v129_v8 }
 0x163   :  { %201 = vpush %v115_v11 }
 0x164   :  { %203 = vpush %v220_v13 }
 0x165   :  { %205 = vpush %v131_v12 }
 0x166   :  { %207 = vpush %v222_v14 }
 0x190   :  { %s198_s30 = spop %197 }
 0x191   :  { %s200_s4 = spop %199 }
 0x194   :  { %s202_s5 = spop %201 }
 0x195   :  { %s204_s6 = spop %203 }
 0x196   :  { %s121_s7 = smul.f32 %s204_s6, %s202_s5  ;;  %s206_s8 = spop %205 }
 0x197   :  { %s208_s9 = spop %207 }
 0x198   :  { %s137_s10 = smul.f32 %s208_s9, %s206_s8  ;;  %s366_s4 = smov (!%p140_p8, %s200_s4), %s121_s7 }
 0x199   :  { %v142_v17 = vstv %s366_s4 }
 0x19a   :  { %s368_s30 = smov (!%p138_p9, %s198_s30), %s137_s10  ;;  %vm143_vm4 = vcmp.gt.f32.partialorder %v312_v37, %v142_v17 }
 0x19b   :  { %v145_v18 = vstv %s368_s30  ;;  %vm144_vm6 = vmand %vm58_vm2, %vm143_vm4 }
 0x19c   :  { %vm146_vm5 = vcmp.lt.f32.partialorder %v312_v37, %v145_v18  ;;  %v149_v21 = vsel %vm144_vm6, %v148_v19, 0.0 }
 0x19d   :  { %vm147_vm7 = vmand %vm59_vm3, %vm146_vm5  ;;  %v150_v23 = vsel %vm50_vm1, %v149_v21, 0.0 }
 0x19e   :  { %v163_v22 = vsel %vm147_vm7, %v162_v20, 0.0  ;;  %151 = vadd.xlane.f32.xlu1 %v150_v23 }
 0x19f   :  { %v164_v24 = vsel %vm50_vm1, %v163_v22, 0.0 }
 0x1a0   :  { %165 = vadd.xlane.f32.xlu0 %v164_v24 }
 0x22b   :  { %v152_v25 = vpop.xlane.xlu1 %151 }
 0x22c   :  { %v153_v27 = vrot.slane %v152_v25, 4 }
 0x22d   :  { %v166_v26 = vpop.xlane.xlu0 %165 }
 0x22e   :  { %v167_v28 = vrot.slane %v166_v26, 4  ;;  %v154_v29 = vadd.f32 %v153_v27, %v152_v25 }
 0x230   :  { %v168_v30 = vadd.f32 %v167_v28, %v166_v26  ;;  %v155_v31 = vrot.slane %v154_v29, 2 }
 0x232   :  { %v169_v32 = vrot.slane %v168_v30, 2  ;;  %v156_v33 = vadd.f32 %v155_v31, %v154_v29 }
 0x234   :  { %v170_v34 = vadd.f32 %v169_v32, %v168_v30  ;;  %v157_v2 = vrot.slane %v156_v33, 1 }
 0x236   :  { %v171_v35 = vrot.slane %v170_v34, 1  ;;  %v158_v36 = vadd.f32 %v157_v2, %v156_v33 }
 0x238   :  { %v172_v37 = vadd.f32 %v171_v35, %v170_v34  ;;  %209 = vpush %v158_v36 }
 0x23a   :  { %211 = vpush %v172_v37 }
 0x269   :  { %s210_s11 = spop %209 }
 0x26b   :  { %s212_s12 = spop %211 }
 0x26c   :  { %s174_s13 = sadd.f32 %s212_s12, %s210_s11 }
 0x26e   :  { %176 = sst [smem:[#allocation6]] %s174_s13 }
 0x26f   :  { %254 = shalt.err (!%p251_p12)
}
 0x270   :  { %s262_s21 = smov [#allocation6]  }
 0x271   :  { %184 = dma.smem_to_hbm %s262_s21, 16, %s364_s3, [#allocation5]  }
 0x272   :  { %257 = dma.done.wait [#allocation5], 16  }
 0x273   :  { %258 = vsyncadd [#allocation5], 4294967280 }
 0x274   :  { %188 = sfence }
 0x275   :  { %189 = vsyncpa [#allocation4], 1 }
 0x276   :  { %190 = vsyncpa [#allocation5], 1 }

</bundles_post_ra>
